<compile_context>
chip_gen: v5e
topology: v5e:2x2
jax: 0.10.0
libtpu: 0.0.40
codegen_flags: <defaults>
</compile_context>

<pallas_src>
import jax
import jax.numpy as jnp
from jax.experimental import pallas as pl
from jax.experimental.pallas import tpu as pltpu

_LANES = 512               # lane-dense last dim (multiple of 128)
_TILE_ROWS_MAX = 1024      # (1024, 512) f32 tile = 2 MiB per buffer
_MIN_GRID_STEPS = 4        # keep >=4 steps for pipelining / v7x 2-TC sharding
_PALLAS_MIN_ELEMS = 1 << 18  # below this plain jnp (XLA fused) is already at roofline


def _round_up(a, m):
    return ((a + m - 1) // m) * m


def _linear2_kernel(x_ref, s_ref, y1_ref, y2_ref):
    # Packed scalars in SMEM: [w1, b1, w2, b2]; read once per tile.
    w1 = s_ref[0]
    b1 = s_ref[1]
    w2 = s_ref[2]
    b2 = s_ref[3]

    x = x_ref[...]                    # (tile_r, 512) f32, lane-dense
    y1 = x * w1 + b1                  # linear1: x @ W1.T + b1
    y1_ref[...] = y1
    y2_ref[...] = y1 * w2 + b2        # linear2: chained -> bit-exact vs reference


def linear_model_forward(x, w1, b1, w2, b2, *, force_pallas=False):
    """Fused two-layer Linear(1,1) forward pass.

    Args:
      x:  (N, 1) float32 input (PyTorch nn.Linear convention).
      w1, b1, w2, b2: (1, 1) float32 parameters of the two layers.
      force_pallas: force the Pallas path even for small N (testing).
    Returns:
      (y1, y2): both (N, 1) float32, matching the PyTorch module's outputs.
    """
    n, f = x.shape
    assert f == 1, "LinearModel expects in_features == 1"
    x = x.astype(jnp.float32)

    w1s = jnp.asarray(w1, jnp.float32).reshape(())
    b1s = jnp.asarray(b1, jnp.float32).reshape(())
    w2s = jnp.asarray(w2, jnp.float32).reshape(())
    b2s = jnp.asarray(b2, jnp.float32).reshape(())

    def _plain(xs):
        y1 = xs * w1s + b1s
        y2 = y1 * w2s + b2s
        return y1, y2

    # Small / mid-size inputs: XLA's fused elementwise kernel is already at
    # HBM roofline with zero launch / layout overhead.
    if n < _PALLAS_MIN_ELEMS and not force_pallas:
        return _plain(x)

    lanes = _LANES
    rows = n // lanes
    tail = n - rows * lanes

    if rows == 0:
        # Entire input is a sub-512-element tail.
        return _plain(x)

    flat = x.reshape(-1)                     # free (contiguous view)
    if tail:
        main = flat[: rows * lanes]          # aligned prefix -> kernel
        tail_x = flat[rows * lanes:]         # <512 elems -> plain jnp
    else:
        main = flat                          # no copies at all on this path
    x2d = main.reshape(rows, lanes)          # free, lane-dense view

    # Adaptive tile: >= _MIN_GRID_STEPS grid steps, <= _TILE_ROWS_MAX rows.
    # Non-divisible rows are handled by Pallas boundary masking (no padding).
    if rows <= 8:
        tile_r = rows                        # full-dim block (rows < 8 allowed)
    else:
        tile_r = min(_TILE_ROWS_MAX,
                     _round_up(pl.cdiv(rows, _MIN_GRID_STEPS), 8))
        tile_r = min(tile_r, _round_up(rows, 8))
    grid = (pl.cdiv(rows, tile_r),)

    scalars = jnp.stack([w1s, b1s, w2s, b2s])   # (4,) f32 -> SMEM

    vspec = pl.BlockSpec((tile_r, lanes), lambda i: (i, 0))
    sspec = pl.BlockSpec(memory_space=pltpu.MemorySpace.SMEM)

    y1_2d, y2_2d = pl.pallas_call(
        _linear2_kernel,
        out_shape=(
            jax.ShapeDtypeStruct((rows, lanes), jnp.float32),
            jax.ShapeDtypeStruct((rows, lanes), jnp.float32),
        ),
        grid=grid,
        in_specs=[vspec, sspec],
        out_specs=(vspec, vspec),
        compiler_params=pltpu.CompilerParams(
            dimension_semantics=("parallel",),   # shard tiles across v7x's 2 TCs
            vmem_limit_bytes=32 * 1024 * 1024,   # 12 MiB live at max tile; explicit
        ),
    )(x2d, scalars)

    if tail:
        y1_t, y2_t = _plain(tail_x)
        y1 = jnp.concatenate([y1_2d.reshape(-1), y1_t]).reshape(n, 1)
        y2 = jnp.concatenate([y2_2d.reshape(-1), y2_t]).reshape(n, 1)
    else:
        y1 = y1_2d.reshape(n, 1)             # free reshapes back to (N, 1)
        y2 = y2_2d.reshape(n, 1)
    return y1, y2


if __name__ == "__main__":
    # Deterministic parameters, exactly as in the PyTorch __init__:
    #   linear1.weight = 1.0, linear1.bias = 0.0
    #   linear2.weight = 1.0, linear2.bias = 0.0
    w1 = jnp.full((1, 1), 1.0, dtype=jnp.float32)
    b1 = jnp.full((1, 1), 0.0, dtype=jnp.float32)
    w2 = jnp.full((1, 1), 1.0, dtype=jnp.float32)
    b2 = jnp.full((1, 1), 0.0, dtype=jnp.float32)

    key = jax.random.PRNGKey(0)
    k0, k1, k2 = jax.random.split(key, 3)

    def ref(x):
        y1 = x @ w1.T + b1[0]
        y2 = y1 @ w2.T + b2[0]
        return y1, y2

    # (a) tiny batch, same scale as the PyTorch demo -> plain-jnp fast path.
    x_small = jax.random.normal(k0, (2, 1), dtype=jnp.float32)
    y1_s, y2_s = linear_model_forward(x_small, w1, b1, w2, b2)
    jax.block_until_ready((y1_s, y2_s))

    # (b) lane-aligned batch -> zero-copy Pallas path (rows=16, grid of 2 tiles).
    x_aligned = jax.random.normal(k1, (8192, 1), dtype=jnp.float32)
    y1_a, y2_a = linear_model_forward(x_aligned, w1, b1, w2, b2,
                                      force_pallas=True)
    jax.block_until_ready((y1_a, y2_a))

    # (c) ragged batch -> aligned prefix through the kernel + jnp tail.
    x_ragged = jax.random.normal(k2, (8292, 1), dtype=jnp.float32)
    y1_r, y2_r = linear_model_forward(x_ragged, w1, b1, w2, b2,
                                      force_pallas=True)
    jax.block_until_ready((y1_r, y2_r))

    for (got1, got2), x in (((y1_s, y2_s), x_small),
                            ((y1_a, y2_a), x_aligned),
                            ((y1_r, y2_r), x_ragged)):
        exp1, exp2 = ref(x)
        assert got1.shape == x.shape and got2.shape == x.shape
        assert jnp.allclose(got1, exp1, atol=1e-6)
        assert jnp.allclose(got2, exp2, atol=1e-6)

    print("KERNEL_OK")
</pallas_src>

<mosaic_0001>
module attributes {stable_mosaic.version = 11 : i64} {
  func.func @_linear2_kernel(%arg0: i32, %arg1: memref<8x512xf32, #tpu.memory_space<vmem>>, %arg2: memref<4xf32, #tpu.memory_space<smem>>, %arg3: memref<8x512xf32, #tpu.memory_space<vmem>>, %arg4: memref<8x512xf32, #tpu.memory_space<vmem>>) attributes {dimension_semantics = [#tpu.dimension_semantics<parallel>], iteration_bounds = array<i64: 2>, scalar_prefetch = 0 : i64, scratch_operands = 0 : i64, tpu.core_type = #tpu.core_type<tc>, window_params = [{transform_indices = @transform_0, window_bounds = array<i64: 8, 512>}, {transform_indices = @transform_1, window_bounds = array<i64: 4>}, {transform_indices = @transform_2, window_bounds = array<i64: 8, 512>}, {transform_indices = @transform_3, window_bounds = array<i64: 8, 512>}]} {
    %c0 = arith.constant 0 : index
    %0 = memref.load %arg2[%c0] : memref<4xf32, #tpu.memory_space<smem>>
    %c1 = arith.constant 1 : index
    %1 = memref.load %arg2[%c1] : memref<4xf32, #tpu.memory_space<smem>>
    %c2 = arith.constant 2 : index
    %2 = memref.load %arg2[%c2] : memref<4xf32, #tpu.memory_space<smem>>
    %c3 = arith.constant 3 : index
    %3 = memref.load %arg2[%c3] : memref<4xf32, #tpu.memory_space<smem>>
    %c0_0 = arith.constant 0 : index
    %c0_1 = arith.constant 0 : index
    %4 = vector.load %arg1[%c0_0, %c0_1] : memref<8x512xf32, #tpu.memory_space<vmem>>, vector<8x512xf32>
    %5 = vector.broadcast %0 : f32 to vector<8x512xf32>
    %6 = arith.mulf %4, %5 : vector<8x512xf32>
    %7 = vector.broadcast %1 : f32 to vector<8x512xf32>
    %8 = arith.addf %6, %7 : vector<8x512xf32>
    %c0_2 = arith.constant 0 : index
    %c0_3 = arith.constant 0 : index
    %9 = vector.load %arg3[%c0_2, %c0_3] : memref<8x512xf32, #tpu.memory_space<vmem>>, vector<8x512xf32>
    tpu.vector_store %arg3[%c0_2, %c0_3], %8 {strides = array<i32>} : memref<8x512xf32, #tpu.memory_space<vmem>>, vector<8x512xf32>,
    %10 = vector.broadcast %2 : f32 to vector<8x512xf32>
    %11 = arith.mulf %8, %10 : vector<8x512xf32>
    %12 = vector.broadcast %3 : f32 to vector<8x512xf32>
    %13 = arith.addf %11, %12 : vector<8x512xf32>
    %c0_4 = arith.constant 0 : index
    %c0_5 = arith.constant 0 : index
    %14 = vector.load %arg4[%c0_4, %c0_5] : memref<8x512xf32, #tpu.memory_space<vmem>>, vector<8x512xf32>
    tpu.vector_store %arg4[%c0_4, %c0_5], %13 {strides = array<i32>} : memref<8x512xf32, #tpu.memory_space<vmem>>, vector<8x512xf32>,
    return
  }
  func.func @transform_0(%arg0: i32) -> (i32, i32) {
    %c0_i32 = arith.constant 0 : i32
    %c0_i32_0 = arith.constant 0 : i32
    return %arg0, %c0_i32 : i32, i32
  }
  func.func @transform_1(%arg0: i32) -> i32 {
    %c0_i32 = arith.constant 0 : i32
    %c0_i32_0 = arith.constant 0 : i32
    return %c0_i32 : i32
  }
  func.func @transform_2(%arg0: i32) -> (i32, i32) {
    %c0_i32 = arith.constant 0 : i32
    %c0_i32_0 = arith.constant 0 : i32
    return %arg0, %c0_i32 : i32, i32
  }
  func.func @transform_3(%arg0: i32) -> (i32, i32) {
    %c0_i32 = arith.constant 0 : i32
    %c0_i32_0 = arith.constant 0 : i32
    return %arg0, %c0_i32 : i32, i32
  }
}

</mosaic_0001>

<bundles_post_ra>
// kernel: tpu_custom_call.1
= control target key start
LH: loop header
LB: loop body
LE: loop exit
PB: predicated region body
PF: predicated region fallthrough
CT: control target
= control target key end

     0   :  { %9 = vsyncpa [#allocation3], 0  ;;  %s820_s0 = inlined_call_operand.hbm [shape: f32[16,512], index: 0, kind: input, shape index: {}]   ;;  %s821_s1 = inlined_call_operand.hbm [shape: f32[4], index: 1, kind: input, shape index: {}]   ;;  %s822_s2 = inlined_call_operand.hbm [shape: f32[16,512], index: 2, kind: output, shape index: {0}]   ;;  %s823_s3 = inlined_call_operand.hbm [shape: f32[16,512], index: 3, kind: output, shape index: {1}]  }
   0x1   :  { %11 = vsyncpa [#allocation3 + $0x1], 0 }
   0x2   :  { %12 = vsyncpa [#allocation5], 0 }
   0x3   :  { %13 = vsyncpa [#allocation4], 0 }
   0x4   :  { %15 = vsyncpa [#allocation4 + $0x1], 0 }
   0x5   :  { %16 = vsyncpa [#allocation9], 0 }
   0x6   :  { %18 = vsyncpa [#allocation9 + $0x1], 0  ;;  %s660_s12 = smov 0   ;;  %s662_s13 = smov 0  }
   0x7   :  { %s664_s14 = smov 0   ;;  %s666_s15 = smov 0  }
   0x8 LB: > { %s681_s16 = sadd.s32 4294967295, %s637_s15   ;;  %s402_s17 = sadd.s32 4294967294, %s637_s15   ;;  %s637_s15 = sphi %s666_s15, %s833_s15   ;;  %s633_s14 = sphi %s664_s14, %s832_s14   ;;  %s629_s13 = sphi %s662_s13, %s831_s13   ;;  %s625_s12 = sphi %s660_s12, %s830_s12  }
   0x9   : > { %p44_p0 = scmp.ne.s32.totalorder %s629_s13, %s625_s12  ;;  %p45_p1 = scmp.eq.s32.totalorder %s681_s16, 0 }
   0xa   : > { %p89_p2 = scmp.eq.s32.totalorder %s681_s16, 1  ;;  %p95_p3 = scmp.eq.s32.totalorder %s402_s17, 1 }
   0xb   : > { %p690_p4 = por %p45_p1, %p44_p0  ;;  %p403_p5 = scmp.ge.s32.totalorder %s637_s15, 1 }
   0xc   : > { %p695_p6 = por %p95_p3, %p44_p0  ;;  %p128_p7 = scmp.lt.s32.totalorder %s637_s15, 3 }
   0xd   : > { %s140_s22 = sshll.u32 %s821_s1, 4  ;;  %s711_s24 = sadd.s32 1, %s637_s15   ;;  %s141_s22 = int_to_ptr.hbm [resolvable:$true] %s140_s22 }
   0xe   : > { %p703_p8 = pnand %p403_p5, %p128_p7  ;;  %s28_s25 = ssub.s32 %s637_s15, %s711_s24 }
   0xf   : > { %p29_p12 = scmp.eq.s32.totalorder %s28_s25, 0  ;;  %s31_s26 = sadd.s32 1, %s633_s14 }
  0x10   : > { %p438_p10 = pneg %p703_p8  ;;  %p38_p13 = scmp.ne.s32.totalorder %s633_s14, %s629_s13 }
  0x11   : > { %s639_s27 = smov [#allocation6]   ;;  %p39_p0 = scmp.eq.s32.totalorder %s637_s15, 0 }
  0x12   : > { %p439_p11 = pnand %p438_p10, %p45_p1  ;;  %p726_p3 = por %p89_p2, %p38_p13 }
  0x13   : > { %s721_s28 = scalar_select %p29_p12, %s633_s14, %s31_s26  }
  0x14   : > { %441 = dma.hbm_to_smem (!%p439_p11), %s141_s22, 16, %s639_s27, [#allocation5]  }
  0x15   : > { %s151_s30 = sand.u32 1, %s633_s14   ;;  %p40_p5 = por %p39_p0, %p38_p13 }
  0x16   : > { %p454_p7 = scmp.lt.s32.totalorder %s637_s15, 2  ;;  %s406_s4 = sshll.u32 %s151_s30, 5 }
  0x17   : > { %s425_s5 = sshll.u32 %s637_s15, 5  ;;  %s155_s10 = scalar_lea.vmem [#allocation2], %s406_s4 }
  0x18   : > { %s160_s8 = scalar_lea.hbm %s820_s0, %s425_s5  ;;  %s164_s11 = sshll.u32 %s155_s10, 4  ;;  %s165_s11 = int_to_ptr.vmem [resolvable:$true] %s164_s11 }
  0x19   : > { %s162_s9 = sshll.u32 %s160_s8, 4  ;;  %p736_p10 = pnand %p454_p7, %p40_p5  ;;  %s163_s9 = int_to_ptr.hbm [resolvable:$true] %s162_s9 }
  0x1a   : > { %s152_s20 = scalar_lea.sflag [#allocation3], %s151_s30  ;;  %s505_s21 = sshra.s32 %s163_s9, 4  ;;  %s506_s21 = int_to_ptr.hbm [resolvable:$true] %s505_s21 }
  0x1b   : > { %s507_s22 = scalar_lea.hbm %s506_s21, 32  ;;  %p509_p11 = pneg %p736_p10 }
  0x1c   : > { %p508_p2 = scmp.ne.s32.totalorder %s506_s21, %s507_s22  ;;  %s512_s27 = scalar_lea.hbm %s820_s0, 64 }
  0x1d   : > { %p513_p0 = scmp.lt.s32.totalorder %s506_s21, %s820_s0  ;;  %p514_p5 = scmp.lt.s32.totalorder %s512_s27, %s507_s22 }
  0x1e   : > { %p510_p12 = pnand %p509_p11, %p508_p2 }
  0x1f   : > { %p515_p7 = por %p514_p5, %p513_p0 }
  0x20   : > { %p511_p13 = pneg %p510_p12 }
  0x22   : > { %p516_p9 = pnand %p515_p7, %p511_p13 }
  0x24   : > { %519 = shalt.err (!%p516_p9)
}
  0x25   : > { %445 = dma.hbm_to_vmem [thread:$0]  (!%p736_p10), %s163_s9, 512, %s165_s11, %s152_s20  }
  0x26   : > { %173 = sbr.rel (%p703_p8) target bundleno = 79 (0x4f), region = 28  ;;  %s753_s30 = sand.u32 (!%p703_p8), 1, %s629_s13  }
  0x27   : > { %s756_s6 = sshll.u32 (!%p703_p8), %s753_s30, 5  ;;  %s176_s7 = scalar_lea.sflag (!%p703_p8), [#allocation3], %s753_s30 }
  0x28   : > { %s179_s8 = scalar_lea.vmem (!%p703_p8), [#allocation2], %s756_s6 }
  0x2b   : > { %608 = dma.done.wait (%p690_p4), %s176_s7, 512  }
  0x2c   : > { %610 = vsyncadd (%p690_p4), %s176_s7, 4294966784 }
  0x2d   : > { %612 = dma.done.wait (%p45_p1), [#allocation5], 16  }
  0x2e   : > { %614 = vsyncadd (%p45_p1), [#allocation5], 4294967280 }
  0x2f   : > { %190 = sfence }
  0x30   : > { %s214_s23 = sld [smem:[#allocation6]]  ;;  %s426_s17 = sshll.u32 %s681_s16, 5  ;;  %v218_v0 = vld [vmem:[%s179_s8] sm:$0xff]  ;;  %v219_v1 = vld [vmem:[%s179_s8 + $0x8] sm:$0xff]  ;;  %v220_v2 = vld [vmem:[%s179_s8 + $0x10] sm:$0xff] }
  0x31   : > { %s414_s9 = sld [smem:[#allocation6 + $0x1]]  ;;  %v221_v3 = vld [vmem:[%s179_s8 + $0x18] sm:$0xff]  ;;  %s267_s21 = scalar_lea.hbm %s822_s2, %s426_s17 }
  0x32   : > { %s415_s10 = sld [smem:[#allocation6 + $0x2]]  ;;  %s206_s16 = scalar_lea.vmem [#allocation7], %s756_s6 }
  0x33   : > { %s416_s11 = sld [smem:[#allocation6 + $0x3]]  ;;  %s269_s22 = sshll.u32 %s206_s16, 4  ;;  %s270_s22 = int_to_ptr.vmem [resolvable:$true] %s269_s22 }
  0x34   : > { %s271_s25 = sshll.u32 %s267_s21, 4  ;;  %s776_s4 = scalar_lea.hbm %s823_s3, %s426_s17  ;;  %s272_s25 = int_to_ptr.hbm [resolvable:$true] %s271_s25 }
  0x35   : > { %s213_s5 = scalar_lea.vmem [#allocation8], %s756_s6  ;;  %s286_s8 = sshll.u32 %s776_s4, 4  ;;  %s287_s8 = int_to_ptr.hbm [resolvable:$true] %s286_s8 }
  0x36   : > { %v222_v4 = vstv %s214_s23  ;;  %s284_s7 = sshll.u32 %s213_s5, 4  ;;  %s251_s23 = scalar_lea.sflag [#allocation4], %s753_s30  ;;  %s285_s7 = int_to_ptr.vmem [resolvable:$true] %s284_s7 }
  0x37   : > { %v223_v5 = vmul.f32 %v222_v4, %v218_v0  ;;  %v227_v6 = vstv %s414_s9  ;;  %v224_v7 = vmul.f32 %v222_v4, %v219_v1  ;;  %v225_v8 = vmul.f32 %v222_v4, %v220_v2  ;;  %s549_s9 = sshra.s32 %s272_s25, 4  ;;  %s555_s18 = scalar_lea.hbm %s822_s2, 64  ;;  %s550_s9 = int_to_ptr.hbm [resolvable:$true] %s549_s9 }
  0x38   : > { %v226_v9 = vmul.f32 %v222_v4, %v221_v3  ;;  %v236_v10 = vstv %s415_s10  ;;  %s551_s10 = scalar_lea.hbm %s550_s9, 32  ;;  %p556_p9 = scmp.lt.s32.totalorder %s550_s9, %s822_s2 }
  0x39   : > { %v228_v11 = vadd.f32 %v227_v6, %v223_v5  ;;  %v229_v12 = vadd.f32 %v227_v6, %v224_v7  ;;  %v230_v13 = vadd.f32 %v227_v6, %v225_v8  ;;  %v241_v15 = vstv %s416_s11  ;;  %p552_p1 = scmp.ne.s32.totalorder %s550_s9, %s551_s10  ;;  %p557_p10 = scmp.lt.s32.totalorder %s555_s18, %s551_s10 }
  0x3a   : > { %v231_v14 = vadd.f32 %v227_v6, %v226_v9 }
  0x3b   : > { %232 = vst [vmem:[%s206_s16] sm:$0xff] %v228_v11  ;;  %v237_v16 = vmul.f32 %v236_v10, %v228_v11  ;;  %v238_v17 = vmul.f32 %v236_v10, %v229_v12  ;;  %v239_v18 = vmul.f32 %v236_v10, %v230_v13  ;;  %p553_p4 = pnand %p552_p1, %p726_p3  ;;  %p558_p2 = por %p557_p10, %p556_p9 }
  0x3c   : > { %233 = vst [vmem:[%s206_s16 + $0x8] sm:$0xff] %v229_v12  ;;  %v240_v19 = vmul.f32 %v236_v10, %v231_v14 }
  0x3d   : > { %234 = vst [vmem:[%s206_s16 + $0x10] sm:$0xff] %v230_v13  ;;  %v242_v20 = vadd.f32 %v241_v15, %v237_v16  ;;  %v243_v21 = vadd.f32 %v241_v15, %v238_v17  ;;  %v244_v22 = vadd.f32 %v241_v15, %v239_v18  ;;  %p554_p8 = pneg %p553_p4 }
  0x3e   : > { %235 = vst [vmem:[%s206_s16 + $0x18] sm:$0xff] %v231_v14  ;;  %v245_v23 = vadd.f32 %v241_v15, %v240_v19 }
  0x3f   : > { %246 = vst [vmem:[%s213_s5] sm:$0xff] %v242_v20  ;;  %p559_p11 = pnand %p558_p2, %p554_p8 }
  0x41   : > { %562 = shalt.err (!%p559_p11)
}
  0x42   : > { %434 = dma.vmem_to_hbm [thread:$0]  (%p726_p3), %s270_s22, 512, %s272_s25, %s251_s23   ;;  %247 = vst [vmem:[%s213_s5 + $0x8] sm:$0xff] %v243_v21 }
  0x43   : > { %248 = vst [vmem:[%s213_s5 + $0x10] sm:$0xff] %v244_v22  ;;  %s256_s6 = scalar_lea.sflag [#allocation9], %s753_s30  ;;  %s577_s16 = sshra.s32 %s287_s8, 4  ;;  %s578_s16 = int_to_ptr.hbm [resolvable:$true] %s577_s16 }
  0x44   : > { %249 = vst [vmem:[%s213_s5 + $0x18] sm:$0xff] %v245_v23  ;;  %s579_s26 = scalar_lea.hbm %s578_s16, 32  ;;  %s583_s9 = scalar_lea.hbm %s823_s3, 64 }
  0x45   : > { %p580_p12 = scmp.ne.s32.totalorder %s578_s16, %s579_s26  ;;  %p584_p5 = scmp.lt.s32.totalorder %s578_s16, %s823_s3 }
  0x46   : > { %p585_p7 = scmp.lt.s32.totalorder %s583_s9, %s579_s26 }
  0x47   : > { %p581_p13 = pnand %p580_p12, %p726_p3 }
  0x48   : > { %p586_p1 = por %p585_p7, %p584_p5 }
  0x49   : > { %p582_p0 = pneg %p581_p13 }
  0x4b   : > { %p587_p4 = pnand %p586_p1, %p582_p0 }
  0x4d   : > { %590 = shalt.err (!%p587_p4)
}
  0x4e   : > { %435 = dma.vmem_to_hbm [thread:$0]  (%p726_p3), %s285_s7, 512, %s287_s8, %s256_s6  }
  0x4f PF: > { %s298_s30 = sand.u32 1, %s625_s12   ;;  %p829_p8 = scmp.ge.s32.totalorder %s637_s15, 2 }
  0x50   : > { %s299_s22 = scalar_lea.sflag [#allocation4], %s298_s30 }
  0x51   : > { %p447_p9 = pnand %p829_p8, %p695_p6 }
  0x53   : > { %p448_p10 = pneg %p447_p9 }
  0x55   : > { %616 = dma.done.wait (%p448_p10), %s299_s22, 512  }
  0x56   : > { %618 = vsyncadd (%p448_p10), %s299_s22, 4294966784  ;;  %s309_s25 = scalar_lea.sflag [#allocation9], %s298_s30 }
  0x57   : > { %620 = dma.done.wait (%p448_p10), %s309_s25, 512  }
  0x58   : > { %622 = vsyncadd (%p448_p10), %s309_s25, 4294966784  ;;  %p21_p3 = scmp.ge.s32.totalorder %s711_s24, 4   ;;  %s830_s12 = smov %s629_s13 }
  0x59   : > { %s831_s13 = smov %s633_s14  ;;  %s832_s14 = smov %s721_s28 }
  0x5a   : > { %s833_s15 = smov %s711_s24  ;;  %23 = sbr.rel (!%p21_p3) target bundleno = 8 (0x8), region = 95 }
  0x5f   :  { %315 = vsyncpa [#allocation3], 1 }
  0x60   :  { %317 = vsyncpa [#allocation3 + $0x1], 1 }
  0x61   :  { %318 = vsyncpa [#allocation4], 1 }
  0x62   :  { %320 = vsyncpa [#allocation4 + $0x1], 1 }
  0x63   :  { %321 = vsyncpa [#allocation9], 1 }
  0x64   :  { %323 = vsyncpa [#allocation9 + $0x1], 1 }
  0x65   :  { %324 = vsyncpa [#allocation5], 1 }
  0x66   :  { %326 = vsyncpa [#allocation5 + $0x1], 1 }

</bundles_post_ra>
